<compile_context>
chip_gen: v5e
topology: v5e:2x2
jax: 0.10.0
libtpu: 0.0.40
codegen_flags: <defaults>
</compile_context>

<pallas_src>
import functools

import jax
import jax.numpy as jnp
from jax import lax
from jax.experimental import pallas as pl
from jax.experimental.pallas import tpu as pltpu

LANES = 128
MAX_TILE_ROWS = 2048            # (2048, 128) f32 = 1 MiB per input block.
                                # (On v7x, 4096 amortizes per-step overhead even
                                # better; 2048 is chosen to be safe everywhere.)
VMEM_LIMIT_BYTES = 32 * 1024 * 1024


@functools.lru_cache(maxsize=1)
def _num_tensorcores():
    """Best-effort TensorCores-per-chip (2 on v7x, 1 on v5e/v6e); default 1."""
    try:
        info = pltpu.get_tpu_info()
    except Exception:
        return 1
    for name in ("num_tensorcores", "tensorcores_per_chip", "num_cores",
                 "cores_per_chip", "core_count"):
        val = getattr(info, name, None)
        try:
            val = int(val)
        except (TypeError, ValueError):
            continue
        if 1 <= val <= 8:
            return val
    return 1


def _sublane_multiple(dtype):
    # Rows per native sublane-packing unit: f32 -> 8, bf16/f16 -> 16.
    return max(8, 32 // max(1, jnp.dtype(dtype).itemsize))


def _dice_partial_kernel(x_ref, t_ref, out_ref, *, n_valid, tile_rows,
                         tiles_per_core, grid_tiles):
    c = pl.program_id(0)            # core split ("parallel")
    i = pl.program_id(1)            # tile index within this core's range
    logical = c * tiles_per_core + i

    @pl.when(i == 0)
    def _init():
        out_ref[...] = jnp.zeros_like(out_ref)

    def _fold(v):
        # (tile_rows, 128) -> (8, 128) vreg-shaped partial: pure VPU adds,
        # keeps (8, 128) tile boundaries intact, no per-tile XLU reduce.
        return jnp.sum(v.reshape(tile_rows // 8, 8, LANES), axis=0)

    def _accumulate(xs, tm):
        out_ref[0, 0] += _fold(xs * tm)   # partial intersection
        out_ref[0, 1] += _fold(xs)        # partial sum(sigmoid(inputs))
        out_ref[0, 2] += _fold(tm)        # partial sum(targets)

    # Only the last real tile (which may extend past the valid data) and any
    # clamped/duplicate tiles (logical >= grid_tiles) need masking; every
    # interior tile is fully in-bounds and takes the unmasked fast path.
    needs_mask = logical >= (grid_tiles - 1)

    @pl.when(jnp.logical_not(needs_mask))
    def _fast():
        xs = jax.nn.sigmoid(x_ref[...].astype(jnp.float32))
        tm = t_ref[...].astype(jnp.float32)
        _accumulate(xs, tm)

    @pl.when(needs_mask)
    def _masked():
        x = x_ref[...].astype(jnp.float32)
        t = t_ref[...].astype(jnp.float32)
        # Row-wise validity (avoids int32 overflow of a flat-index compare):
        # global row r is fully valid iff r < n//128; the single ragged row
        # r == n//128 is valid only for lanes < n % 128.
        full_rows = n_valid // LANES
        rem = n_valid % LANES
        rid = logical * tile_rows + lax.broadcasted_iota(
            jnp.int32, (tile_rows, LANES), 0)
        mask = rid < full_rows
        if rem:
            lid = lax.broadcasted_iota(jnp.int32, (tile_rows, LANES), 1)
            mask = jnp.logical_or(
                mask, jnp.logical_and(rid == full_rows, lid < rem))
        xs = jnp.where(mask, jax.nn.sigmoid(x), 0.0)
        tm = jnp.where(mask, t, 0.0)
        _accumulate(xs, tm)


def dice_loss(inputs, targets, smooth=1.0):
    """Pallas TPU implementation of DiceLoss.forward (returns a scalar f32)."""
    x = jnp.ravel(inputs)
    t = jnp.ravel(targets)
    # Bool / integer arrays are cast once here (byte-wide blocks would need
    # 32-row sublane packing and buy nothing); float inputs (f32/bf16/f16)
    # keep their native dtype so HBM traffic stays minimal.
    if not jnp.issubdtype(x.dtype, jnp.floating):
        x = x.astype(jnp.float32)
    if not jnp.issubdtype(t.dtype, jnp.floating):
        t = t.astype(jnp.float32)

    n = x.shape[0]
    # Pad so the flat arrays can be viewed as (rows_padded, 128) with
    # rows_padded a multiple of each dtype's sublane packing. Usually a tiny
    # (or no) pad; pad values are irrelevant because the kernel masks by n.
    rows = pl.cdiv(n, LANES)
    row_mult = max(_sublane_multiple(x.dtype), _sublane_multiple(t.dtype))
    rows_padded = ((rows + row_mult - 1) // row_mult) * row_mult
    total = rows_padded * LANES
    if total != n:
        x = jnp.pad(x, (0, total - n))
        t = jnp.pad(t, (0, total - n))
    x2 = x.reshape(rows_padded, LANES)
    t2 = t.reshape(rows_padded, LANES)

    tile_rows = min(MAX_TILE_ROWS, rows_padded)        # multiple of row_mult
    grid_tiles = pl.cdiv(rows_padded, tile_rows)
    ncores = _num_tensorcores()
    tiles_per_core = pl.cdiv(grid_tiles, ncores)
    max_block = grid_tiles - 1

    def in_index(c, i):
        # Clamp so the DMA always targets a valid block; logically
        # out-of-range tiles take the masked path and contribute zero.
        return (jnp.minimum(c * tiles_per_core + i, max_block), 0)

    kernel = functools.partial(
        _dice_partial_kernel, n_valid=n, tile_rows=tile_rows,
        tiles_per_core=tiles_per_core, grid_tiles=grid_tiles)

    partials = pl.pallas_call(
        kernel,
        out_shape=jax.ShapeDtypeStruct((ncores, 3, 8, LANES), jnp.float32),
        grid_spec=pltpu.PrefetchScalarGridSpec(
            num_scalar_prefetch=0,
            grid=(ncores, tiles_per_core),
            in_specs=[
                pl.BlockSpec((tile_rows, LANES), in_index),
                pl.BlockSpec((tile_rows, LANES), in_index),
            ],
            out_specs=pl.BlockSpec((1, 3, 8, LANES), lambda c, i: (c, 0, 0, 0)),
        ),
        compiler_params=pltpu.CompilerParams(
            dimension_semantics=("parallel", "arbitrary"),
            vmem_limit_bytes=VMEM_LIMIT_BYTES),
    )(x2, t2)

    # Tiny epilogue in plain JAX: final cross-lane/sublane reduce + dice ratio.
    sums = jnp.sum(partials, axis=(0, 2, 3))   # (3,)
    smooth = jnp.float32(smooth)
    dice = (2.0 * sums[0] + smooth) / (sums[1] + sums[2] + smooth)
    return jnp.float32(1.0) - dice


def _dice_loss_ref(inputs, targets, smooth=1.0):
    x = jax.nn.sigmoid(jnp.ravel(inputs).astype(jnp.float32))
    t = jnp.ravel(targets).astype(jnp.float32)
    inter = jnp.sum(x * t)
    return 1.0 - (2.0 * inter + smooth) / (jnp.sum(x) + jnp.sum(t) + smooth)


if __name__ == "__main__":
    key = jax.random.PRNGKey(0)
    k1, k2, k3, k4, k5, k6 = jax.random.split(key, 6)

    # 1) Segmentation-style NCHW inputs (single tile, masked path, rem == 0).
    x = jax.random.normal(k1, (2, 4, 16, 16), dtype=jnp.float32)
    t = (jax.random.uniform(k2, (2, 4, 16, 16)) > 0.5).astype(jnp.float32)
    loss = jax.block_until_ready(dice_loss(x, t, smooth=1.0))
    ref = jax.block_until_ready(_dice_loss_ref(x, t, smooth=1.0))
    assert jnp.allclose(loss, ref, rtol=1e-5, atol=1e-5), (loss, ref)

    # 2) Ragged element count (not a multiple of 128) -> ragged-lane mask.
    xr = jax.random.normal(k3, (2, 3, 17, 19), dtype=jnp.float32)
    tr = (jax.random.uniform(k4, (2, 3, 17, 19)) > 0.5).astype(jnp.float32)
    loss_r = jax.block_until_ready(dice_loss(xr, tr, smooth=1.0))
    ref_r = jax.block_until_ready(_dice_loss_ref(xr, tr, smooth=1.0))
    assert jnp.allclose(loss_r, ref_r, rtol=1e-5, atol=1e-5), (loss_r, ref_r)

    # 3) Multi-tile input: exercises the unmasked fast path on interior tiles
    #    plus the masked partial last tile.
    xl = jax.random.normal(k5, (2, 4, 192, 180), dtype=jnp.float32)
    tl = (jax.random.uniform(k6, (2, 4, 192, 180)) > 0.5).astype(jnp.float32)
    loss_l = jax.block_until_ready(dice_loss(xl, tl, smooth=1.0))
    ref_l = jax.block_until_ready(_dice_loss_ref(xl, tl, smooth=1.0))
    assert jnp.allclose(loss_l, ref_l, rtol=1e-4, atol=1e-4), (loss_l, ref_l)

    print("KERNEL_OK")
</pallas_src>

<mosaic_0001>
module attributes {stable_mosaic.version = 11 : i64} {
  func.func @_dice_partial_kernel(%arg0: i32, %arg1: i32, %arg2: memref<16x128xf32, #tpu.memory_space<vmem>>, %arg3: memref<16x128xf32, #tpu.memory_space<vmem>>, %arg4: memref<1x3x8x128xf32, #tpu.memory_space<vmem>>) attributes {dimension_semantics = [#tpu.dimension_semantics<parallel>, #tpu.dimension_semantics<arbitrary>], iteration_bounds = array<i64: 1, 1>, scalar_prefetch = 0 : i64, scratch_operands = 0 : i64, tpu.core_type = #tpu.core_type<tc>, window_params = [{transform_indices = @transform_0, window_bounds = array<i64: 16, 128>}, {transform_indices = @transform_1, window_bounds = array<i64: 16, 128>}, {transform_indices = @transform_2, window_bounds = array<i64: 1, 3, 8, 128>}]} {
    %c1_i32 = arith.constant 1 : i32
    %0 = arith.muli %arg0, %c1_i32 : i32
    %1 = arith.addi %0, %arg1 : i32
    %c0_i32 = arith.constant 0 : i32
    %2 = arith.cmpi eq, %arg1, %c0_i32 : i32
    %3 = arith.extui %2 : i1 to i32
    %c0_i32_0 = arith.constant 0 : i32
    %4 = arith.cmpi ne, %3, %c0_i32_0 : i32
    scf.if %4 {
      %cst = arith.constant 0.000000e+00 : f32
      %11 = vector.broadcast %cst : f32 to vector<1x3x8x128xf32>
      %c0 = arith.constant 0 : index
      %c0_4 = arith.constant 0 : index
      %c0_5 = arith.constant 0 : index
      %c0_6 = arith.constant 0 : index
      %12 = vector.load %arg4[%c0, %c0_4, %c0_5, %c0_6] : memref<1x3x8x128xf32, #tpu.memory_space<vmem>>, vector<1x3x8x128xf32>
      tpu.vector_store %arg4[%c0, %c0_4, %c0_5, %c0_6], %11 {strides = array<i32>} : memref<1x3x8x128xf32, #tpu.memory_space<vmem>>, vector<1x3x8x128xf32>,
    } else {
    }
    %c0_i32_1 = arith.constant 0 : i32
    %5 = arith.cmpi sge, %1, %c0_i32_1 : i32
    %true = arith.constant true
    %6 = arith.xori %5, %true : i1
    %7 = arith.extui %6 : i1 to i32
    %c0_i32_2 = arith.constant 0 : i32
    %8 = arith.cmpi ne, %7, %c0_i32_2 : i32
    scf.if %8 {
      %c0 = arith.constant 0 : index
      %c0_4 = arith.constant 0 : index
      %11 = vector.load %arg2[%c0, %c0_4] : memref<16x128xf32, #tpu.memory_space<vmem>>, vector<16x128xf32>
      %12 = arith.negf %11 : vector<16x128xf32>
      %13 = math.exp %12 : vector<16x128xf32>
      %cst = arith.constant 1.000000e+00 : f32
      %14 = vector.broadcast %cst : f32 to vector<16x128xf32>
      %15 = arith.addf %14, %13 : vector<16x128xf32>
      %16 = arith.divf %14, %15 : vector<16x128xf32>
      %c0_5 = arith.constant 0 : index
      %c0_6 = arith.constant 0 : index
      %17 = vector.load %arg3[%c0_5, %c0_6] : memref<16x128xf32, #tpu.memory_space<vmem>>, vector<16x128xf32>
      %c0_7 = arith.constant 0 : index
      %c0_8 = arith.constant 0 : index
      %c0_9 = arith.constant 0 : index
      %c0_10 = arith.constant 0 : index
      %18 = vector.load %arg4[%c0_7, %c0_8, %c0_9, %c0_10] : memref<1x3x8x128xf32, #tpu.memory_space<vmem>>, vector<1x1x8x128xf32>
      %19 = vector.shape_cast %18 : vector<1x1x8x128xf32> to vector<8x128xf32>
      %20 = arith.mulf %16, %17 : vector<16x128xf32>
      %21 = vector.shape_cast %20 : vector<16x128xf32> to vector<2x8x128xf32>
      %cst_11 = arith.constant dense<0.000000e+00> : vector<8x128xf32>
      %22 = vector.multi_reduction <add>, %21, %cst_11 [0] : vector<2x8x128xf32> to vector<8x128xf32>
      %23 = arith.addf %19, %22 : vector<8x128xf32>
      %c0_12 = arith.constant 0 : index
      %c0_13 = arith.constant 0 : index
      %c0_14 = arith.constant 0 : index
      %c0_15 = arith.constant 0 : index
      %24 = vector.load %arg4[%c0_12, %c0_13, %c0_14, %c0_15] : memref<1x3x8x128xf32, #tpu.memory_space<vmem>>, vector<1x1x8x128xf32>
      %25 = vector.shape_cast %24 : vector<1x1x8x128xf32> to vector<8x128xf32>
      %26 = vector.shape_cast %23 : vector<8x128xf32> to vector<1x1x8x128xf32>
      tpu.vector_store %arg4[%c0_12, %c0_13, %c0_14, %c0_15], %26 {strides = array<i32>} : memref<1x3x8x128xf32, #tpu.memory_space<vmem>>, vector<1x1x8x128xf32>,
      %c0_16 = arith.constant 0 : index
      %c1 = arith.constant 1 : index
      %c0_17 = arith.constant 0 : index
      %c0_18 = arith.constant 0 : index
      %27 = vector.load %arg4[%c0_16, %c1, %c0_17, %c0_18] : memref<1x3x8x128xf32, #tpu.memory_space<vmem>>, vector<1x1x8x128xf32>
      %28 = vector.shape_cast %27 : vector<1x1x8x128xf32> to vector<8x128xf32>
      %29 = vector.shape_cast %16 : vector<16x128xf32> to vector<2x8x128xf32>
      %cst_19 = arith.constant dense<0.000000e+00> : vector<8x128xf32>
      %30 = vector.multi_reduction <add>, %29, %cst_19 [0] : vector<2x8x128xf32> to vector<8x128xf32>
      %31 = arith.addf %28, %30 : vector<8x128xf32>
      %c0_20 = arith.constant 0 : index
      %c1_21 = arith.constant 1 : index
      %c0_22 = arith.constant 0 : index
      %c0_23 = arith.constant 0 : index
      %32 = vector.load %arg4[%c0_20, %c1_21, %c0_22, %c0_23] : memref<1x3x8x128xf32, #tpu.memory_space<vmem>>, vector<1x1x8x128xf32>
      %33 = vector.shape_cast %32 : vector<1x1x8x128xf32> to vector<8x128xf32>
      %34 = vector.shape_cast %31 : vector<8x128xf32> to vector<1x1x8x128xf32>
      tpu.vector_store %arg4[%c0_20, %c1_21, %c0_22, %c0_23], %34 {strides = array<i32>} : memref<1x3x8x128xf32, #tpu.memory_space<vmem>>, vector<1x1x8x128xf32>,
      %c0_24 = arith.constant 0 : index
      %c2 = arith.constant 2 : index
      %c0_25 = arith.constant 0 : index
      %c0_26 = arith.constant 0 : index
      %35 = vector.load %arg4[%c0_24, %c2, %c0_25, %c0_26] : memref<1x3x8x128xf32, #tpu.memory_space<vmem>>, vector<1x1x8x128xf32>
      %36 = vector.shape_cast %35 : vector<1x1x8x128xf32> to vector<8x128xf32>
      %37 = vector.shape_cast %17 : vector<16x128xf32> to vector<2x8x128xf32>
      %cst_27 = arith.constant dense<0.000000e+00> : vector<8x128xf32>
      %38 = vector.multi_reduction <add>, %37, %cst_27 [0] : vector<2x8x128xf32> to vector<8x128xf32>
      %39 = arith.addf %36, %38 : vector<8x128xf32>
      %c0_28 = arith.constant 0 : index
      %c2_29 = arith.constant 2 : index
      %c0_30 = arith.constant 0 : index
      %c0_31 = arith.constant 0 : index
      %40 = vector.load %arg4[%c0_28, %c2_29, %c0_30, %c0_31] : memref<1x3x8x128xf32, #tpu.memory_space<vmem>>, vector<1x1x8x128xf32>
      %41 = vector.shape_cast %40 : vector<1x1x8x128xf32> to vector<8x128xf32>
      %42 = vector.shape_cast %39 : vector<8x128xf32> to vector<1x1x8x128xf32>
      tpu.vector_store %arg4[%c0_28, %c2_29, %c0_30, %c0_31], %42 {strides = array<i32>} : memref<1x3x8x128xf32, #tpu.memory_space<vmem>>, vector<1x1x8x128xf32>,
    } else {
    }
    %9 = arith.extui %5 : i1 to i32
    %c0_i32_3 = arith.constant 0 : i32
    %10 = arith.cmpi ne, %9, %c0_i32_3 : i32
    scf.if %10 {
      %c0 = arith.constant 0 : index
      %c0_4 = arith.constant 0 : index
      %11 = vector.load %arg2[%c0, %c0_4] : memref<16x128xf32, #tpu.memory_space<vmem>>, vector<16x128xf32>
      %c0_5 = arith.constant 0 : index
      %c0_6 = arith.constant 0 : index
      %12 = vector.load %arg3[%c0_5, %c0_6] : memref<16x128xf32, #tpu.memory_space<vmem>>, vector<16x128xf32>
      %c16_i32 = arith.constant 16 : i32
      %13 = arith.muli %1, %c16_i32 : i32
      %14 = tpu.iota {dimensions = array<i32: 0>} : vector<16x128xi32>
      %15 = vector.broadcast %13 : i32 to vector<16x128xi32>
      %16 = arith.addi %15, %14 : vector<16x128xi32>
      %c16_i32_7 = arith.constant 16 : i32
      %17 = vector.broadcast %c16_i32_7 : i32 to vector<16x128xi32>
      %18 = arith.cmpi slt, %16, %17 : vector<16x128xi32>
      %19 = arith.negf %11 : vector<16x128xf32>
      %20 = math.exp %19 : vector<16x128xf32>
      %cst = arith.constant 1.000000e+00 : f32
      %21 = vector.broadcast %cst : f32 to vector<16x128xf32>
      %22 = arith.addf %21, %20 : vector<16x128xf32>
      %23 = arith.divf %21, %22 : vector<16x128xf32>
      %cst_8 = arith.constant 0.000000e+00 : f32
      %24 = vector.broadcast %cst_8 : f32 to vector<16x128xf32>
      %25 = arith.select %18, %23, %24 : vector<16x128xi1>, vector<16x128xf32>
      %cst_9 = arith.constant 0.000000e+00 : f32
      %26 = vector.broadcast %cst_9 : f32 to vector<16x128xf32>
      %27 = arith.select %18, %12, %26 : vector<16x128xi1>, vector<16x128xf32>
      %c0_10 = arith.constant 0 : index
      %c0_11 = arith.constant 0 : index
      %c0_12 = arith.constant 0 : index
      %c0_13 = arith.constant 0 : index
      %28 = vector.load %arg4[%c0_10, %c0_11, %c0_12, %c0_13] : memref<1x3x8x128xf32, #tpu.memory_space<vmem>>, vector<1x1x8x128xf32>
      %29 = vector.shape_cast %28 : vector<1x1x8x128xf32> to vector<8x128xf32>
      %30 = arith.mulf %25, %27 : vector<16x128xf32>
      %31 = vector.shape_cast %30 : vector<16x128xf32> to vector<2x8x128xf32>
      %cst_14 = arith.constant dense<0.000000e+00> : vector<8x128xf32>
      %32 = vector.multi_reduction <add>, %31, %cst_14 [0] : vector<2x8x128xf32> to vector<8x128xf32>
      %33 = arith.addf %29, %32 : vector<8x128xf32>
      %c0_15 = arith.constant 0 : index
      %c0_16 = arith.constant 0 : index
      %c0_17 = arith.constant 0 : index
      %c0_18 = arith.constant 0 : index
      %34 = vector.load %arg4[%c0_15, %c0_16, %c0_17, %c0_18] : memref<1x3x8x128xf32, #tpu.memory_space<vmem>>, vector<1x1x8x128xf32>
      %35 = vector.shape_cast %34 : vector<1x1x8x128xf32> to vector<8x128xf32>
      %36 = vector.shape_cast %33 : vector<8x128xf32> to vector<1x1x8x128xf32>
      tpu.vector_store %arg4[%c0_15, %c0_16, %c0_17, %c0_18], %36 {strides = array<i32>} : memref<1x3x8x128xf32, #tpu.memory_space<vmem>>, vector<1x1x8x128xf32>,
      %c0_19 = arith.constant 0 : index
      %c1 = arith.constant 1 : index
      %c0_20 = arith.constant 0 : index
      %c0_21 = arith.constant 0 : index
      %37 = vector.load %arg4[%c0_19, %c1, %c0_20, %c0_21] : memref<1x3x8x128xf32, #tpu.memory_space<vmem>>, vector<1x1x8x128xf32>
      %38 = vector.shape_cast %37 : vector<1x1x8x128xf32> to vector<8x128xf32>
      %39 = vector.shape_cast %25 : vector<16x128xf32> to vector<2x8x128xf32>
      %cst_22 = arith.constant dense<0.000000e+00> : vector<8x128xf32>
      %40 = vector.multi_reduction <add>, %39, %cst_22 [0] : vector<2x8x128xf32> to vector<8x128xf32>
      %41 = arith.addf %38, %40 : vector<8x128xf32>
      %c0_23 = arith.constant 0 : index
      %c1_24 = arith.constant 1 : index
      %c0_25 = arith.constant 0 : index
      %c0_26 = arith.constant 0 : index
      %42 = vector.load %arg4[%c0_23, %c1_24, %c0_25, %c0_26] : memref<1x3x8x128xf32, #tpu.memory_space<vmem>>, vector<1x1x8x128xf32>
      %43 = vector.shape_cast %42 : vector<1x1x8x128xf32> to vector<8x128xf32>
      %44 = vector.shape_cast %41 : vector<8x128xf32> to vector<1x1x8x128xf32>
      tpu.vector_store %arg4[%c0_23, %c1_24, %c0_25, %c0_26], %44 {strides = array<i32>} : memref<1x3x8x128xf32, #tpu.memory_space<vmem>>, vector<1x1x8x128xf32>,
      %c0_27 = arith.constant 0 : index
      %c2 = arith.constant 2 : index
      %c0_28 = arith.constant 0 : index
      %c0_29 = arith.constant 0 : index
      %45 = vector.load %arg4[%c0_27, %c2, %c0_28, %c0_29] : memref<1x3x8x128xf32, #tpu.memory_space<vmem>>, vector<1x1x8x128xf32>
      %46 = vector.shape_cast %45 : vector<1x1x8x128xf32> to vector<8x128xf32>
      %47 = vector.shape_cast %27 : vector<16x128xf32> to vector<2x8x128xf32>
      %cst_30 = arith.constant dense<0.000000e+00> : vector<8x128xf32>
      %48 = vector.multi_reduction <add>, %47, %cst_30 [0] : vector<2x8x128xf32> to vector<8x128xf32>
      %49 = arith.addf %46, %48 : vector<8x128xf32>
      %c0_31 = arith.constant 0 : index
      %c2_32 = arith.constant 2 : index
      %c0_33 = arith.constant 0 : index
      %c0_34 = arith.constant 0 : index
      %50 = vector.load %arg4[%c0_31, %c2_32, %c0_33, %c0_34] : memref<1x3x8x128xf32, #tpu.memory_space<vmem>>, vector<1x1x8x128xf32>
      %51 = vector.shape_cast %50 : vector<1x1x8x128xf32> to vector<8x128xf32>
      %52 = vector.shape_cast %49 : vector<8x128xf32> to vector<1x1x8x128xf32>
      tpu.vector_store %arg4[%c0_31, %c2_32, %c0_33, %c0_34], %52 {strides = array<i32>} : memref<1x3x8x128xf32, #tpu.memory_space<vmem>>, vector<1x1x8x128xf32>,
    } else {
    }
    return
  }
  func.func @transform_0(%arg0: i32, %arg1: i32) -> (i32, i32) {
    %c1_i32 = arith.constant 1 : i32
    %0 = arith.muli %arg0, %c1_i32 : i32
    %1 = arith.addi %0, %arg1 : i32
    %c0_i32 = arith.constant 0 : i32
    %2 = arith.minsi %1, %c0_i32 : i32
    %c0_i32_0 = arith.constant 0 : i32
    %c0_i32_1 = arith.constant 0 : i32
    return %2, %c0_i32_0 : i32, i32
  }
  func.func @transform_1(%arg0: i32, %arg1: i32) -> (i32, i32) {
    %c1_i32 = arith.constant 1 : i32
    %0 = arith.muli %arg0, %c1_i32 : i32
    %1 = arith.addi %0, %arg1 : i32
    %c0_i32 = arith.constant 0 : i32
    %2 = arith.minsi %1, %c0_i32 : i32
    %c0_i32_0 = arith.constant 0 : i32
    %c0_i32_1 = arith.constant 0 : i32
    return %2, %c0_i32_0 : i32, i32
  }
  func.func @transform_2(%arg0: i32, %arg1: i32) -> (i32, i32, i32, i32) {
    %c0_i32 = arith.constant 0 : i32
    %c0_i32_0 = arith.constant 0 : i32
    %c0_i32_1 = arith.constant 0 : i32
    %c0_i32_2 = arith.constant 0 : i32
    return %arg0, %c0_i32, %c0_i32_0, %c0_i32_1 : i32, i32, i32, i32
  }
}

</mosaic_0001>

<bundles_post_ra>
// kernel: tpu_custom_call.1
= control target key start
LH: loop header
LB: loop body
LE: loop exit
PB: predicated region body
PF: predicated region fallthrough
CT: control target
= control target key end

     0   :  { %7 = vsyncpa [#allocation3], 0  ;;  %s367_s0 = inlined_call_operand.hbm [shape: f32[16,128], index: 0, kind: input, shape index: {}]   ;;  %s368_s1 = inlined_call_operand.hbm [shape: f32[16,128], index: 1, kind: input, shape index: {}]   ;;  %s369_s2 = inlined_call_operand.hbm [shape: f32[1,3,8,128], index: 2, kind: output, shape index: {}]  }
   0x1   :  { %8 = vsyncpa [#allocation6], 0 }
   0x2   :  { %9 = vsyncpa [#allocation4], 0  ;;  %s20_s11 = sshll.u32 %s367_s0, 4  ;;  %s329_s12 = smov [#allocation2]   ;;  %s21_s11 = int_to_ptr.hbm [resolvable:$true] %s20_s11 }
   0x3   :  { %s22_s13 = sshll.u32 %s329_s12, 4  ;;  %s39_s16 = sshll.u32 %s368_s1, 4  ;;  %s23_s13 = int_to_ptr.vmem [resolvable:$true] %s22_s13  ;;  %s40_s16 = int_to_ptr.hbm [resolvable:$true] %s39_s16 }
   0x4   :  { %s330_s17 = smov 128   ;;  %s331_s18 = smov 8  }
   0x5   :  { %28 = dma.hbm_to_vmem [thread:$0]  %s21_s11, 256, %s23_s13, [#allocation3], %s330_s17, %s330_s17, %s331_s18  }
   0x6   :  { %s332_s19 = smov [#allocation5]  }
   0x7   :  { %s41_s20 = sshll.u32 %s332_s19, 4  ;;  %s42_s20 = int_to_ptr.vmem [resolvable:$true] %s41_s20 }
   0x8   :  { %47 = dma.hbm_to_vmem [thread:$0]  %s40_s16, 256, %s42_s20, [#allocation6], %s330_s17, %s330_s17, %s331_s18  }
   0x9   :  { %323 = dma.done.wait [#allocation3], 256  }
   0xa   :  { %324 = vsyncadd [#allocation3], 4294967040 }
   0xb   :  { %325 = dma.done.wait [#allocation6], 256  }
   0xc   :  { %326 = vsyncadd [#allocation6], 4294967040  ;;  %v138_v0 = vld [vmem:[#allocation2] sm:$0xff]  ;;  %v139_v1 = vld [vmem:[#allocation2 + $0x8] sm:$0xff]  ;;  %s333_s0 = smov [#allocation7]   ;;  %s215_s23 = sshll.u32 %s369_s2, 4  ;;  %s216_s23 = int_to_ptr.hbm [resolvable:$true] %s215_s23 }
   0xd   :  { %v140_v2 = vld [vmem:[#allocation5] sm:$0xff]  ;;  %v141_v3 = vld [vmem:[#allocation5 + $0x8] sm:$0xff]  ;;  %v235_v4 = vmul.f32 -1.442695, %v138_v0  ;;  %v236_v5 = vmul.f32 -1.442695, %v139_v1 }
   0xe   :  { %v206_v6 = vadd.f32 %v141_v3, %v140_v2  ;;  %s213_s1 = sshll.u32 %s333_s0, 4  ;;  %s214_s1 = int_to_ptr.vmem [resolvable:$true] %s213_s1 }
   0xf   :  { %243 = vpow2.f32 %v235_v4 }
  0x10   :  { %245 = vpow2.f32 %v236_v5  ;;  %208 = vst [vmem:[#allocation7 + $0x10] sm:$0xff] %v206_v6 }
  0x15   :  { %v244_v7 = vpop.eup %243 }
  0x16   :  { %v246_v8 = vpop.eup %245  ;;  %v157_v9 = vadd.f32 1.0, %v244_v7 }
  0x17   :  { %v158_v10 = vadd.f32 1.0, %v246_v8 }
  0x18   :  { %247 = vrcp.f32 %v157_v9  ;;  %vm164_vm0 = vweird.f32 %v157_v9  ;;  %v170_v14 = vand.u32 2147483648, %v157_v9  ;;  %v168_v17 = vand.u32 2147483647, %v157_v9 }
  0x19   :  { %249 = vrcp.f32 %v158_v10  ;;  %v185_v18 = vand.u32 2147483648, %v158_v10  ;;  %vm179_vm2 = vweird.f32 %v158_v10  ;;  %v183_v20 = vand.u32 2147483647, %v158_v10 }
  0x1a   :  { %v171_v22 = vor.u32 1.1754944e-38, %v170_v14  ;;  %vm169_vm5 = vcmp.eq.f32.partialorder %v168_v17, 8.507059e+37 }
  0x1b   :  { %v186_v25 = vor.u32 1.1754944e-38, %v185_v18  ;;  %vm184_vm7 = vcmp.eq.f32.partialorder %v183_v20, 8.507059e+37 }
  0x1e   :  { %v248_v11 = vpop.eup %247 }
  0x1f   :  { %v250_v12 = vpop.eup %249  ;;  %v160_v13 = vmul.f32 %v248_v11, %v157_v9  ;;  %vm165_vm1 = vweird.f32 %v248_v11 }
  0x20   :  { %v175_v15 = vmul.f32 %v250_v12, %v158_v10  ;;  %vm180_vm3 = vweird.f32 %v250_v12  ;;  %vm166_vm4 = vmor %vm164_vm0, %vm165_vm1 }
  0x21   :  { %v161_v16 = vsub.f32 1.0, %v160_v13  ;;  %vm181_vm6 = vmor %vm179_vm2, %vm180_vm3 }
  0x22   :  { %v176_v19 = vsub.f32 1.0, %v175_v15 }
  0x23   :  { %v162_v21 = vmul.f32 %v248_v11, %v161_v16 }
  0x24   :  { %v177_v23 = vmul.f32 %v250_v12, %v176_v19 }
  0x25   :  { %v163_v24 = vadd.f32 %v248_v11, %v162_v21 }
  0x26   :  { %v178_v26 = vadd.f32 %v250_v12, %v177_v23 }
  0x27   :  { %v167_v27 = vsel %vm166_vm4, %v248_v11, %v163_v24 }
  0x28   :  { %v172_v28 = vsel %vm169_vm5, %v171_v22, %v167_v27  ;;  %v182_v29 = vsel %vm181_vm6, %v250_v12, %v178_v26 }
  0x29   :  { %v187_v30 = vsel %vm184_vm7, %v186_v25, %v182_v29  ;;  %v194_v31 = vmul.f32 %v172_v28, %v140_v2 }
  0x2a   :  { %v195_v32 = vmul.f32 %v187_v30, %v141_v3  ;;  %v201_v33 = vadd.f32 %v187_v30, %v172_v28 }
  0x2c   :  { %v196_v34 = vadd.f32 %v195_v32, %v194_v31  ;;  %203 = vst [vmem:[#allocation7 + $0x8] sm:$0xff] %v201_v33 }
  0x2e   :  { %198 = vst [vmem:[#allocation7] sm:$0xff] %v196_v34 }
  0x2f   :  { %221 = dma.vmem_to_hbm [thread:$0]  %s214_s1, 384, %s216_s23, [#allocation4], %s330_s17, %s330_s17, %s331_s18  }
  0x30   :  { %327 = dma.done.wait [#allocation4], 384  }
  0x31   :  { %328 = vsyncadd [#allocation4], 4294966912 }
  0x32   :  { %226 = vsyncpa [#allocation3], 1 }
  0x33   :  { %227 = vsyncpa [#allocation6], 1 }
  0x34   :  { %228 = vsyncpa [#allocation4], 1 }

</bundles_post_ra>
